<compile_context>
chip_gen: v5e
topology: v5e:2x2
jax: 0.10.0
libtpu: 0.0.40
codegen_flags: <defaults>
</compile_context>

<pallas_src>
import jax
import jax.numpy as jnp
from jax.experimental import pallas as pl
from jax.experimental.pallas import tpu as pltpu


def _round_up(x, m):
    return ((x + m - 1) // m) * m


def _softplus(x):
    # numerically stable softplus: max(x, 0) + log1p(exp(-|x|))
    return jnp.maximum(x, 0.0) + jnp.log1p(jnp.exp(-jnp.abs(x)))


def _sigmoid(x):
    return 1.0 / (1.0 + jnp.exp(-x))


# --------------------------------------------------------------------------- #
# Kernel 1: one-shot parameter sampling + KL (tiny, no grid).
# --------------------------------------------------------------------------- #
def _sample_kl_kernel(scal_ref,                                            # SMEM (4,)
                      w_mu_ref, w_rho_ref, w_theta_ref, u_w_ref, eps_w_ref,  # (1, D_in)
                      b_mu_ref, b_rho_ref, b_theta_ref, u_b_ref, eps_b_ref,  # (1, D_out)
                      w_samp_ref, b_samp_ref, kl_ref):                     # outputs
    log_phi_prior = scal_ref[0]
    log1m_phi_prior = scal_ref[1]
    log_sigma_prior = scal_ref[2]
    inv_sigma_prior_sq = scal_ref[3]

    def branch(mu, rho, theta, u, eps):
        sigma = _softplus(rho)
        # Hard gumbel-softmax gate: sigmoid(z/temp) > 0.5  <=>  z > 0  (temp > 0).
        gate = (theta + jnp.log(u / (1.0 - u)) > 0.0).astype(jnp.float32)
        samp = gate * (mu + sigma * eps)
        # KL: log(phi) = -softplus(-theta), log(1-phi) = -softplus(theta).
        phi = _sigmoid(theta)
        kl = (phi * (-_softplus(-theta) - log_phi_prior)
              + (1.0 - phi) * (-_softplus(theta) - log1m_phi_prior)
              + phi * (log_sigma_prior - jnp.log(sigma)
                       + 0.5 * (sigma * sigma + mu * mu) * inv_sigma_prior_sq
                       - 0.5))
        return samp, kl

    w_samp, kl_w = branch(w_mu_ref[...], w_rho_ref[...], w_theta_ref[...],
                          u_w_ref[...], eps_w_ref[...])
    b_samp, kl_b = branch(b_mu_ref[...], b_rho_ref[...], b_theta_ref[...],
                          u_b_ref[...], eps_b_ref[...])

    w_samp_ref[...] = w_samp
    b_samp_ref[...] = b_samp
    kl_ref[...] = (jnp.sum(kl_w, axis=-1, keepdims=True)
                   + jnp.sum(kl_b, axis=-1, keepdims=True))                # (1, 1)


# --------------------------------------------------------------------------- #
# Kernel 2: streaming batch kernel.
#   X @ expand(w)  ==  (X * w).sum(-1) broadcast over D_out, plus the bias row.
# --------------------------------------------------------------------------- #
def _linear_kernel(x_ref,       # VMEM (tb, D_in)
                   w_ref,       # VMEM (1, D_in)   sampled weight row
                   b_ref,       # VMEM (1, D_out)  sampled bias row
                   out_ref):    # VMEM (tb, D_out)
    y = jnp.sum(x_ref[...] * w_ref[...], axis=-1, keepdims=True)          # (tb, 1)
    out_ref[...] = y + b_ref[...]                                          # (tb, D_out)


def spike_slab_forward(x, params, u_w, u_b, eps_w, eps_b,
                       temp, phi_prior, rho_prior, *, block_b=512):
    """Forward pass. Returns (output [B, D_out], scalar KL)."""
    # For temp > 0 the hard gate depends only on sign(theta + logit(u)); this
    # matches gumbel_softmax(..., hard=True) forward semantics of the module.
    del temp

    x = jnp.asarray(x, jnp.float32)
    B, d_in = x.shape
    d_out = int(params["b_mu"].shape[0])

    # Precompute scalar prior constants once (sent through SMEM).
    phi_prior = jnp.asarray(phi_prior, jnp.float32)
    rho_prior = jnp.asarray(rho_prior, jnp.float32)
    sigma_prior = jax.nn.softplus(rho_prior)
    scalars = jnp.stack([jnp.log(phi_prior),
                         jnp.log1p(-phi_prior),
                         jnp.log(sigma_prior),
                         1.0 / (sigma_prior * sigma_prior)]).astype(jnp.float32)

    row_in = lambda v: jnp.asarray(v, jnp.float32).reshape(1, d_in)
    row_out = lambda v: jnp.asarray(v, jnp.float32).reshape(1, d_out)

    # ---- step 1: sample w, b and compute the KL (one tiny kernel call). -------
    vmem_spec = pl.BlockSpec(memory_space=pltpu.MemorySpace.VMEM)
    smem_spec = pl.BlockSpec(memory_space=pltpu.MemorySpace.SMEM)
    w_samp, b_samp, kl = pl.pallas_call(
        _sample_kl_kernel,
        in_specs=[smem_spec] + [vmem_spec] * 10,
        out_specs=(vmem_spec, vmem_spec, vmem_spec),
        out_shape=(jax.ShapeDtypeStruct((1, d_in), jnp.float32),
                   jax.ShapeDtypeStruct((1, d_out), jnp.float32),
                   jax.ShapeDtypeStruct((1, 1), jnp.float32)),
    )(scalars,
      row_in(params["w_mu"]), row_in(params["w_rho"]), row_in(params["w_theta"]),
      row_in(u_w), row_in(eps_w),
      row_out(params["b_mu"]), row_out(params["b_rho"]), row_out(params["b_theta"]),
      row_out(u_b), row_out(eps_b))

    # ---- step 2: stream the batch (no wrapper pad, no post-slice). ------------
    tb = _round_up(min(block_b, B), 8)
    # Cap tb so double-buffered X + out tiles stay within ~48 MiB (fits v7x's
    # 64 MiB physical VMEM; comfortable on v5e/v6e's 128 MiB).
    bytes_per_row = 4 * (d_in + d_out)
    max_tb = max(8, ((48 << 20) // (2 * bytes_per_row)) // 8 * 8)
    tb = min(tb, max_tb)
    grid = (pl.cdiv(B, tb),)   # ragged last tile: OOB output rows masked by Pallas

    vmem_need = 2 * tb * bytes_per_row + 8 * (d_in + d_out) + (64 << 10)
    vmem_limit = int(min(48 << 20, max(4 * vmem_need, 16 << 20)))

    out = pl.pallas_call(
        _linear_kernel,
        grid=grid,
        in_specs=[pl.BlockSpec((tb, d_in), lambda i: (i, 0)),
                  pl.BlockSpec((1, d_in), lambda i: (0, 0)),
                  pl.BlockSpec((1, d_out), lambda i: (0, 0))],
        out_specs=pl.BlockSpec((tb, d_out), lambda i: (i, 0)),
        out_shape=jax.ShapeDtypeStruct((B, d_out), jnp.float32),
        compiler_params=pltpu.CompilerParams(
            dimension_semantics=("parallel",),
            vmem_limit_bytes=vmem_limit),
    )(x, w_samp, b_samp)

    return out, kl[0, 0]


def reference_forward(x, params, u_w, u_b, eps_w, eps_b, temp, phi_prior, rho_prior):
    """Pure-JAX reference matching the PyTorch module semantics."""
    softplus = jax.nn.softplus
    sig = jax.nn.sigmoid
    sigma_w = softplus(params["w_rho"])
    sigma_b = softplus(params["b_rho"])
    sigma_prior = softplus(rho_prior)
    gw = sig((params["w_theta"] + jnp.log(u_w) - jnp.log(1 - u_w)) / temp) > 0.5
    gb = sig((params["b_theta"] + jnp.log(u_b) - jnp.log(1 - u_b)) / temp) > 0.5
    w = gw.astype(jnp.float32) * (params["w_mu"] + sigma_w * eps_w)
    b = gb.astype(jnp.float32) * (params["b_mu"] + sigma_b * eps_b)
    W = jnp.broadcast_to(w[:, None], (w.shape[0], b.shape[0]))
    out = x @ W + b[None, :]
    w_phi = sig(params["w_theta"])
    b_phi = sig(params["b_theta"])
    kl_w = (w_phi * (jnp.log(w_phi) - jnp.log(phi_prior))
            + (1 - w_phi) * (jnp.log(1 - w_phi) - jnp.log(1 - phi_prior))
            + w_phi * (jnp.log(sigma_prior) - jnp.log(sigma_w)
                       + 0.5 * (sigma_w ** 2 + params["w_mu"] ** 2) / sigma_prior ** 2 - 0.5))
    kl_b = (b_phi * (jnp.log(b_phi) - jnp.log(phi_prior))
            + (1 - b_phi) * (jnp.log(1 - b_phi) - jnp.log(1 - phi_prior))
            + b_phi * (jnp.log(sigma_prior) - jnp.log(sigma_b)
                       + 0.5 * (sigma_b ** 2 + params["b_mu"] ** 2) / sigma_prior ** 2 - 0.5))
    return out, jnp.sum(kl_w) + jnp.sum(kl_b)


if __name__ == "__main__":
    key = jax.random.PRNGKey(0)
    B, D_IN, D_OUT = 34, 32, 16          # ragged batch: exercises the masked last tile
    rho0, lambda0 = -6.0, 0.99
    temp, phi_prior, rho_prior = 0.5, 0.1, -6.0

    k1, k2, k3, k4, k5, k6, k7 = jax.random.split(key, 7)
    theta0 = float(jnp.log(lambda0 / (1.0 - lambda0)))   # logit(lambda0)
    params = {
        "w_mu":    jax.random.uniform(k1, (D_IN,), jnp.float32, -0.6, 0.6),
        "w_rho":   jnp.full((D_IN,), rho0, jnp.float32),
        "w_theta": jnp.full((D_IN,), theta0, jnp.float32),
        "b_mu":    jax.random.uniform(k2, (D_OUT,), jnp.float32, -0.6, 0.6),
        "b_rho":   jnp.full((D_OUT,), rho0, jnp.float32),
        "b_theta": jnp.full((D_OUT,), theta0, jnp.float32),
    }
    x = jax.random.normal(k3, (B, D_IN), jnp.float32)
    # Randomness (torch.rand / Normal(0,1).sample) drawn deterministically here.
    u_w = jax.random.uniform(k4, (D_IN,), jnp.float32, 1e-6, 1.0 - 1e-6)
    u_b = jax.random.uniform(k5, (D_OUT,), jnp.float32, 1e-6, 1.0 - 1e-6)
    eps_w = jax.random.normal(k6, (D_IN,), jnp.float32)
    eps_b = jax.random.normal(k7, (D_OUT,), jnp.float32)

    out, kl = spike_slab_forward(x, params, u_w, u_b, eps_w, eps_b,
                                 temp, phi_prior, rho_prior, block_b=16)
    jax.block_until_ready((out, kl))

    ref_out, ref_kl = reference_forward(x, params, u_w, u_b, eps_w, eps_b,
                                        temp, phi_prior, rho_prior)
    assert out.shape == (B, D_OUT)
    assert jnp.allclose(out, ref_out, atol=1e-5, rtol=1e-5), "output mismatch"
    assert jnp.allclose(kl, ref_kl, atol=1e-4, rtol=1e-5), "KL mismatch"
    print("KERNEL_OK")
</pallas_src>

<mosaic_0001>
module attributes {stable_mosaic.version = 11 : i64} {
  func.func @_sample_kl_kernel(%arg0: memref<4xf32, #tpu.memory_space<smem>>, %arg1: memref<1x32xf32, #tpu.memory_space<vmem>>, %arg2: memref<1x32xf32, #tpu.memory_space<vmem>>, %arg3: memref<1x32xf32, #tpu.memory_space<vmem>>, %arg4: memref<1x32xf32, #tpu.memory_space<vmem>>, %arg5: memref<1x32xf32, #tpu.memory_space<vmem>>, %arg6: memref<1x16xf32, #tpu.memory_space<vmem>>, %arg7: memref<1x16xf32, #tpu.memory_space<vmem>>, %arg8: memref<1x16xf32, #tpu.memory_space<vmem>>, %arg9: memref<1x16xf32, #tpu.memory_space<vmem>>, %arg10: memref<1x16xf32, #tpu.memory_space<vmem>>, %arg11: memref<1x32xf32, #tpu.memory_space<vmem>>, %arg12: memref<1x16xf32, #tpu.memory_space<vmem>>, %arg13: memref<1x1xf32, #tpu.memory_space<vmem>>) attributes {dimension_semantics = [], scalar_prefetch = 0 : i64, scratch_operands = 0 : i64, tpu.core_type = #tpu.core_type<tc>} {
    %c0 = arith.constant 0 : index
    %0 = memref.load %arg0[%c0] : memref<4xf32, #tpu.memory_space<smem>>
    %c1 = arith.constant 1 : index
    %1 = memref.load %arg0[%c1] : memref<4xf32, #tpu.memory_space<smem>>
    %c2 = arith.constant 2 : index
    %2 = memref.load %arg0[%c2] : memref<4xf32, #tpu.memory_space<smem>>
    %c3 = arith.constant 3 : index
    %3 = memref.load %arg0[%c3] : memref<4xf32, #tpu.memory_space<smem>>
    %c0_0 = arith.constant 0 : index
    %c0_1 = arith.constant 0 : index
    %4 = vector.load %arg1[%c0_0, %c0_1] : memref<1x32xf32, #tpu.memory_space<vmem>>, vector<1x32xf32>
    %c0_2 = arith.constant 0 : index
    %c0_3 = arith.constant 0 : index
    %5 = vector.load %arg2[%c0_2, %c0_3] : memref<1x32xf32, #tpu.memory_space<vmem>>, vector<1x32xf32>
    %c0_4 = arith.constant 0 : index
    %c0_5 = arith.constant 0 : index
    %6 = vector.load %arg3[%c0_4, %c0_5] : memref<1x32xf32, #tpu.memory_space<vmem>>, vector<1x32xf32>
    %c0_6 = arith.constant 0 : index
    %c0_7 = arith.constant 0 : index
    %7 = vector.load %arg4[%c0_6, %c0_7] : memref<1x32xf32, #tpu.memory_space<vmem>>, vector<1x32xf32>
    %c0_8 = arith.constant 0 : index
    %c0_9 = arith.constant 0 : index
    %8 = vector.load %arg5[%c0_8, %c0_9] : memref<1x32xf32, #tpu.memory_space<vmem>>, vector<1x32xf32>
    %cst = arith.constant 0.000000e+00 : f32
    %9 = vector.broadcast %cst : f32 to vector<1x32xf32>
    %10 = arith.maximumf %5, %9 : vector<1x32xf32>
    %11 = math.absf %5 : vector<1x32xf32>
    %cst_10 = arith.constant 0.000000e+00 : f32
    %12 = vector.broadcast %cst_10 : f32 to vector<1x32xf32>
    %13 = arith.subf %12, %11 : vector<1x32xf32>
    %14 = math.exp %13 : vector<1x32xf32>
    %15 = math.log1p %14 : vector<1x32xf32>
    %16 = arith.addf %10, %15 : vector<1x32xf32>
    %cst_11 = arith.constant 1.000000e+00 : f32
    %17 = vector.broadcast %cst_11 : f32 to vector<1x32xf32>
    %18 = arith.subf %17, %7 : vector<1x32xf32>
    %19 = arith.divf %7, %18 : vector<1x32xf32>
    %20 = math.log %19 : vector<1x32xf32>
    %21 = arith.addf %6, %20 : vector<1x32xf32>
    %cst_12 = arith.constant 0.000000e+00 : f32
    %22 = vector.broadcast %cst_12 : f32 to vector<1x32xf32>
    %23 = arith.cmpf ogt, %21, %22 : vector<1x32xf32>
    %24 = arith.extui %23 : vector<1x32xi1> to vector<1x32xi32>
    %25 = arith.sitofp %24 : vector<1x32xi32> to vector<1x32xf32>
    %26 = arith.mulf %16, %8 : vector<1x32xf32>
    %27 = arith.addf %4, %26 : vector<1x32xf32>
    %28 = arith.mulf %25, %27 : vector<1x32xf32>
    %cst_13 = arith.constant 0.000000e+00 : f32
    %29 = vector.broadcast %cst_13 : f32 to vector<1x32xf32>
    %30 = arith.subf %29, %6 : vector<1x32xf32>
    %31 = math.exp %30 : vector<1x32xf32>
    %cst_14 = arith.constant 1.000000e+00 : f32
    %32 = vector.broadcast %cst_14 : f32 to vector<1x32xf32>
    %33 = arith.addf %32, %31 : vector<1x32xf32>
    %cst_15 = arith.constant 1.000000e+00 : f32
    %34 = vector.broadcast %cst_15 : f32 to vector<1x32xf32>
    %35 = arith.divf %34, %33 : vector<1x32xf32>
    %cst_16 = arith.constant 0.000000e+00 : f32
    %36 = vector.broadcast %cst_16 : f32 to vector<1x32xf32>
    %37 = arith.subf %36, %6 : vector<1x32xf32>
    %cst_17 = arith.constant 0.000000e+00 : f32
    %38 = vector.broadcast %cst_17 : f32 to vector<1x32xf32>
    %39 = arith.maximumf %37, %38 : vector<1x32xf32>
    %40 = math.absf %37 : vector<1x32xf32>
    %cst_18 = arith.constant 0.000000e+00 : f32
    %41 = vector.broadcast %cst_18 : f32 to vector<1x32xf32>
    %42 = arith.subf %41, %40 : vector<1x32xf32>
    %43 = math.exp %42 : vector<1x32xf32>
    %44 = math.log1p %43 : vector<1x32xf32>
    %45 = arith.addf %39, %44 : vector<1x32xf32>
    %cst_19 = arith.constant 0.000000e+00 : f32
    %46 = vector.broadcast %cst_19 : f32 to vector<1x32xf32>
    %47 = arith.subf %46, %45 : vector<1x32xf32>
    %48 = vector.broadcast %0 : f32 to vector<1x32xf32>
    %49 = arith.subf %47, %48 : vector<1x32xf32>
    %50 = arith.mulf %35, %49 : vector<1x32xf32>
    %cst_20 = arith.constant 1.000000e+00 : f32
    %51 = vector.broadcast %cst_20 : f32 to vector<1x32xf32>
    %52 = arith.subf %51, %35 : vector<1x32xf32>
    %cst_21 = arith.constant 0.000000e+00 : f32
    %53 = vector.broadcast %cst_21 : f32 to vector<1x32xf32>
    %54 = arith.maximumf %6, %53 : vector<1x32xf32>
    %55 = math.absf %6 : vector<1x32xf32>
    %cst_22 = arith.constant 0.000000e+00 : f32
    %56 = vector.broadcast %cst_22 : f32 to vector<1x32xf32>
    %57 = arith.subf %56, %55 : vector<1x32xf32>
    %58 = math.exp %57 : vector<1x32xf32>
    %59 = math.log1p %58 : vector<1x32xf32>
    %60 = arith.addf %54, %59 : vector<1x32xf32>
    %cst_23 = arith.constant 0.000000e+00 : f32
    %61 = vector.broadcast %cst_23 : f32 to vector<1x32xf32>
    %62 = arith.subf %61, %60 : vector<1x32xf32>
    %63 = vector.broadcast %1 : f32 to vector<1x32xf32>
    %64 = arith.subf %62, %63 : vector<1x32xf32>
    %65 = arith.mulf %52, %64 : vector<1x32xf32>
    %66 = arith.addf %50, %65 : vector<1x32xf32>
    %67 = math.log %16 : vector<1x32xf32>
    %68 = vector.broadcast %2 : f32 to vector<1x32xf32>
    %69 = arith.subf %68, %67 : vector<1x32xf32>
    %70 = arith.mulf %16, %16 : vector<1x32xf32>
    %71 = arith.mulf %4, %4 : vector<1x32xf32>
    %72 = arith.addf %70, %71 : vector<1x32xf32>
    %cst_24 = arith.constant 5.000000e-01 : f32
    %73 = vector.broadcast %cst_24 : f32 to vector<1x32xf32>
    %74 = arith.mulf %73, %72 : vector<1x32xf32>
    %75 = vector.broadcast %3 : f32 to vector<1x32xf32>
    %76 = arith.mulf %74, %75 : vector<1x32xf32>
    %77 = arith.addf %69, %76 : vector<1x32xf32>
    %cst_25 = arith.constant 5.000000e-01 : f32
    %78 = vector.broadcast %cst_25 : f32 to vector<1x32xf32>
    %79 = arith.subf %77, %78 : vector<1x32xf32>
    %80 = arith.mulf %35, %79 : vector<1x32xf32>
    %81 = arith.addf %66, %80 : vector<1x32xf32>
    %c0_26 = arith.constant 0 : index
    %c0_27 = arith.constant 0 : index
    %82 = vector.load %arg6[%c0_26, %c0_27] : memref<1x16xf32, #tpu.memory_space<vmem>>, vector<1x16xf32>
    %c0_28 = arith.constant 0 : index
    %c0_29 = arith.constant 0 : index
    %83 = vector.load %arg7[%c0_28, %c0_29] : memref<1x16xf32, #tpu.memory_space<vmem>>, vector<1x16xf32>
    %c0_30 = arith.constant 0 : index
    %c0_31 = arith.constant 0 : index
    %84 = vector.load %arg8[%c0_30, %c0_31] : memref<1x16xf32, #tpu.memory_space<vmem>>, vector<1x16xf32>
    %c0_32 = arith.constant 0 : index
    %c0_33 = arith.constant 0 : index
    %85 = vector.load %arg9[%c0_32, %c0_33] : memref<1x16xf32, #tpu.memory_space<vmem>>, vector<1x16xf32>
    %c0_34 = arith.constant 0 : index
    %c0_35 = arith.constant 0 : index
    %86 = vector.load %arg10[%c0_34, %c0_35] : memref<1x16xf32, #tpu.memory_space<vmem>>, vector<1x16xf32>
    %cst_36 = arith.constant 0.000000e+00 : f32
    %87 = vector.broadcast %cst_36 : f32 to vector<1x16xf32>
    %88 = arith.maximumf %83, %87 : vector<1x16xf32>
    %89 = math.absf %83 : vector<1x16xf32>
    %cst_37 = arith.constant 0.000000e+00 : f32
    %90 = vector.broadcast %cst_37 : f32 to vector<1x16xf32>
    %91 = arith.subf %90, %89 : vector<1x16xf32>
    %92 = math.exp %91 : vector<1x16xf32>
    %93 = math.log1p %92 : vector<1x16xf32>
    %94 = arith.addf %88, %93 : vector<1x16xf32>
    %cst_38 = arith.constant 1.000000e+00 : f32
    %95 = vector.broadcast %cst_38 : f32 to vector<1x16xf32>
    %96 = arith.subf %95, %85 : vector<1x16xf32>
    %97 = arith.divf %85, %96 : vector<1x16xf32>
    %98 = math.log %97 : vector<1x16xf32>
    %99 = arith.addf %84, %98 : vector<1x16xf32>
    %cst_39 = arith.constant 0.000000e+00 : f32
    %100 = vector.broadcast %cst_39 : f32 to vector<1x16xf32>
    %101 = arith.cmpf ogt, %99, %100 : vector<1x16xf32>
    %102 = arith.extui %101 : vector<1x16xi1> to vector<1x16xi32>
    %103 = arith.sitofp %102 : vector<1x16xi32> to vector<1x16xf32>
    %104 = arith.mulf %94, %86 : vector<1x16xf32>
    %105 = arith.addf %82, %104 : vector<1x16xf32>
    %106 = arith.mulf %103, %105 : vector<1x16xf32>
    %cst_40 = arith.constant 0.000000e+00 : f32
    %107 = vector.broadcast %cst_40 : f32 to vector<1x16xf32>
    %108 = arith.subf %107, %84 : vector<1x16xf32>
    %109 = math.exp %108 : vector<1x16xf32>
    %cst_41 = arith.constant 1.000000e+00 : f32
    %110 = vector.broadcast %cst_41 : f32 to vector<1x16xf32>
    %111 = arith.addf %110, %109 : vector<1x16xf32>
    %cst_42 = arith.constant 1.000000e+00 : f32
    %112 = vector.broadcast %cst_42 : f32 to vector<1x16xf32>
    %113 = arith.divf %112, %111 : vector<1x16xf32>
    %cst_43 = arith.constant 0.000000e+00 : f32
    %114 = vector.broadcast %cst_43 : f32 to vector<1x16xf32>
    %115 = arith.subf %114, %84 : vector<1x16xf32>
    %cst_44 = arith.constant 0.000000e+00 : f32
    %116 = vector.broadcast %cst_44 : f32 to vector<1x16xf32>
    %117 = arith.maximumf %115, %116 : vector<1x16xf32>
    %118 = math.absf %115 : vector<1x16xf32>
    %cst_45 = arith.constant 0.000000e+00 : f32
    %119 = vector.broadcast %cst_45 : f32 to vector<1x16xf32>
    %120 = arith.subf %119, %118 : vector<1x16xf32>
    %121 = math.exp %120 : vector<1x16xf32>
    %122 = math.log1p %121 : vector<1x16xf32>
    %123 = arith.addf %117, %122 : vector<1x16xf32>
    %cst_46 = arith.constant 0.000000e+00 : f32
    %124 = vector.broadcast %cst_46 : f32 to vector<1x16xf32>
    %125 = arith.subf %124, %123 : vector<1x16xf32>
    %126 = vector.broadcast %0 : f32 to vector<1x16xf32>
    %127 = arith.subf %125, %126 : vector<1x16xf32>
    %128 = arith.mulf %113, %127 : vector<1x16xf32>
    %cst_47 = arith.constant 1.000000e+00 : f32
    %129 = vector.broadcast %cst_47 : f32 to vector<1x16xf32>
    %130 = arith.subf %129, %113 : vector<1x16xf32>
    %cst_48 = arith.constant 0.000000e+00 : f32
    %131 = vector.broadcast %cst_48 : f32 to vector<1x16xf32>
    %132 = arith.maximumf %84, %131 : vector<1x16xf32>
    %133 = math.absf %84 : vector<1x16xf32>
    %cst_49 = arith.constant 0.000000e+00 : f32
    %134 = vector.broadcast %cst_49 : f32 to vector<1x16xf32>
    %135 = arith.subf %134, %133 : vector<1x16xf32>
    %136 = math.exp %135 : vector<1x16xf32>
    %137 = math.log1p %136 : vector<1x16xf32>
    %138 = arith.addf %132, %137 : vector<1x16xf32>
    %cst_50 = arith.constant 0.000000e+00 : f32
    %139 = vector.broadcast %cst_50 : f32 to vector<1x16xf32>
    %140 = arith.subf %139, %138 : vector<1x16xf32>
    %141 = vector.broadcast %1 : f32 to vector<1x16xf32>
    %142 = arith.subf %140, %141 : vector<1x16xf32>
    %143 = arith.mulf %130, %142 : vector<1x16xf32>
    %144 = arith.addf %128, %143 : vector<1x16xf32>
    %145 = math.log %94 : vector<1x16xf32>
    %146 = vector.broadcast %2 : f32 to vector<1x16xf32>
    %147 = arith.subf %146, %145 : vector<1x16xf32>
    %148 = arith.mulf %94, %94 : vector<1x16xf32>
    %149 = arith.mulf %82, %82 : vector<1x16xf32>
    %150 = arith.addf %148, %149 : vector<1x16xf32>
    %cst_51 = arith.constant 5.000000e-01 : f32
    %151 = vector.broadcast %cst_51 : f32 to vector<1x16xf32>
    %152 = arith.mulf %151, %150 : vector<1x16xf32>
    %153 = vector.broadcast %3 : f32 to vector<1x16xf32>
    %154 = arith.mulf %152, %153 : vector<1x16xf32>
    %155 = arith.addf %147, %154 : vector<1x16xf32>
    %cst_52 = arith.constant 5.000000e-01 : f32
    %156 = vector.broadcast %cst_52 : f32 to vector<1x16xf32>
    %157 = arith.subf %155, %156 : vector<1x16xf32>
    %158 = arith.mulf %113, %157 : vector<1x16xf32>
    %159 = arith.addf %144, %158 : vector<1x16xf32>
    %c0_53 = arith.constant 0 : index
    %c0_54 = arith.constant 0 : index
    %160 = vector.load %arg11[%c0_53, %c0_54] : memref<1x32xf32, #tpu.memory_space<vmem>>, vector<1x32xf32>
    tpu.vector_store %arg11[%c0_53, %c0_54], %28 {strides = array<i32>} : memref<1x32xf32, #tpu.memory_space<vmem>>, vector<1x32xf32>,
    %c0_55 = arith.constant 0 : index
    %c0_56 = arith.constant 0 : index
    %161 = vector.load %arg12[%c0_55, %c0_56] : memref<1x16xf32, #tpu.memory_space<vmem>>, vector<1x16xf32>
    tpu.vector_store %arg12[%c0_55, %c0_56], %106 {strides = array<i32>} : memref<1x16xf32, #tpu.memory_space<vmem>>, vector<1x16xf32>,
    %cst_57 = arith.constant dense<0.000000e+00> : vector<1xf32>
    %162 = vector.multi_reduction <add>, %81, %cst_57 [1] : vector<1x32xf32> to vector<1xf32>
    %163 = vector.shape_cast %162 : vector<1xf32> to vector<1x1xf32>
    %cst_58 = arith.constant dense<0.000000e+00> : vector<1xf32>
    %164 = vector.multi_reduction <add>, %159, %cst_58 [1] : vector<1x16xf32> to vector<1xf32>
    %165 = vector.shape_cast %164 : vector<1xf32> to vector<1x1xf32>
    %166 = arith.addf %163, %165 : vector<1x1xf32>
    %c0_59 = arith.constant 0 : index
    %c0_60 = arith.constant 0 : index
    %167 = vector.load %arg13[%c0_59, %c0_60] : memref<1x1xf32, #tpu.memory_space<vmem>>, vector<1x1xf32>
    tpu.vector_store %arg13[%c0_59, %c0_60], %166 {strides = array<i32>} : memref<1x1xf32, #tpu.memory_space<vmem>>, vector<1x1xf32>,
    return
  }
}

</mosaic_0001>

<bundles_post_ra>
// kernel: tpu_custom_call.1
= control target key start
LH: loop header
LB: loop body
LE: loop exit
PB: predicated region body
PF: predicated region fallthrough
CT: control target
= control target key end

     0   :  { %19 = vsyncpa [#allocation5], 0  ;;  %s828_s0 = inlined_call_operand.hbm [shape: f32[4], index: 0, kind: input, shape index: {}]   ;;  %s829_s1 = inlined_call_operand.hbm [shape: f32[1,32], index: 1, kind: input, shape index: {}]   ;;  %s830_s2 = inlined_call_operand.vmem [shape: f32[1,32], index: 2, kind: input, shape index: {}]   ;;  %s831_s3 = inlined_call_operand.vmem [shape: f32[1,32], index: 3, kind: input, shape index: {}]   ;;  %s832_s4 = inlined_call_operand.vmem [shape: f32[1,32], index: 4, kind: input, shape index: {}]   ;;  %s833_s5 = inlined_call_operand.vmem [shape: f32[1,32], index: 5, kind: input, shape index: {}]   ;;  %s834_s6 = inlined_call_operand.vmem [shape: f32[1,16], index: 6, kind: input, shape index: {}]   ;;  %s835_s7 = inlined_call_operand.vmem [shape: f32[1,16], index: 7, kind: input, shape index: {}]   ;;  %s836_s8 = inlined_call_operand.vmem [shape: f32[1,16], index: 8, kind: input, shape index: {}]   ;;  %s837_s9 = inlined_call_operand.vmem [shape: f32[1,16], index: 9, kind: input, shape index: {}]   ;;  %s838_s10 = inlined_call_operand.vmem [shape: f32[1,16], index: 10, kind: input, shape index: {}]   ;;  %s839_s11 = inlined_call_operand.hbm [shape: f32[1,32], index: 11, kind: output, shape index: {0}]   ;;  %s840_s12 = inlined_call_operand.hbm [shape: f32[1,16], index: 12, kind: output, shape index: {1}]   ;;  %s841_s13 = inlined_call_operand.hbm [shape: f32[1,1], index: 13, kind: output, shape index: {2}]  }
   0x1   :  { %20 = vsyncpa [#allocation3], 0 }
   0x2   :  { %21 = vsyncpa [#allocation4], 0 }
   0x3   :  { %22 = vsyncpa [#allocation9], 0  ;;  %s28_s27 = sshll.u32 %s828_s0, 4  ;;  %s37_s30 = sshll.u32 %s829_s1, 4  ;;  %s29_s27 = int_to_ptr.hbm [resolvable:$true] %s28_s27  ;;  %s38_s30 = int_to_ptr.hbm [resolvable:$true] %s37_s30 }
   0x4   :  { %s541_s14 = smov [#allocation2]   ;;  %s542_s15 = smov [#allocation6]  }
   0x5   :  { %31 = dma.hbm_to_smem %s29_s27, 16, %s541_s14, [#allocation5]  }
   0x6   :  { %s39_s16 = sshll.u32 %s542_s15, 4  ;;  %s40_s16 = int_to_ptr.vmem [resolvable:$true] %s39_s16 }
   0x7   :  { %42 = dma.hbm_to_vmem [thread:$0]  %s38_s30, 16, %s40_s16, [#allocation3]  }
   0x8   :  { %533 = dma.done.wait [#allocation5], 16  }
   0x9   :  { %534 = vsyncadd [#allocation5], 4294967280 }
   0xa   :  { %535 = dma.done.wait [#allocation3], 16  }
   0xb   :  { %536 = vsyncadd [#allocation3], 4294967280 }
   0xc   :  { %69 = sfence }
   0xd   :  { %v626_v0 = vld [vmem:[%s830_s2] sm:$0x1]  ;;  %s651_s21 = sld [smem:[#allocation2]]  ;;  %vm306_vm14 = vcmask 253952   ;;  %vm308_vm15 = vcmask 122880   ;;  %s543_s30 = smov [#allocation8]  }
   0xe   :  { %v631_v1 = vld [vmem:[%s831_s3] sm:$0x1]  ;;  %v80_v2 = vand.u32 2147483647, %v626_v0  ;;  %s658_s22 = sld [smem:[#allocation2 + $0x2]]  ;;  %v79_v24 = vmax.f32 %v626_v0, 0.0 }
   0xf   :  { %v635_v3 = vsub.f32 0.0, %v631_v1  ;;  %v159_v4 = vand.u32 2147483647, %v631_v1  ;;  %v641_v5 = vld [vmem:[%s835_s7] sm:$0x1]  ;;  %s653_s7 = sld [smem:[#allocation2 + $0x1]] }
  0x10   :  { %v81_v6 = vsub.f32 0.0, %v80_v2  ;;  %v648_v10 = vld [vmem:[%s836_s8] sm:$0x1]  ;;  %v198_v11 = vand.u32 2147483647, %v641_v5  ;;  %s660_s8 = sld [smem:[#allocation2 + $0x3]] }
  0x11   :  { %v120_v7 = vmul.f32 1.442695, %v635_v3  ;;  %v139_v8 = vand.u32 2147483647, %v635_v3  ;;  %v160_v9 = vsub.f32 0.0, %v159_v4  ;;  %v656_v16 = vsub.f32 0.0, %v648_v10 }
  0x12   :  { %v82_v12 = vmul.f32 1.442695, %v81_v6  ;;  %v199_v15 = vsub.f32 0.0, %v198_v11  ;;  %v662_v18 = vld [vmem:[#allocation6] sm:$0x1]  ;;  %v158_v26 = vmax.f32 %v631_v1, 0.0 }
  0x13   :  { %381 = vpow2.f32 %v120_v7  ;;  %v140_v13 = vsub.f32 0.0, %v139_v8  ;;  %v161_v14 = vmul.f32 1.442695, %v160_v9  ;;  %v238_v20 = vmul.f32 1.442695, %v656_v16  ;;  %s335_s14 = sshll.u32 %s543_s30, 4  ;;  %s336_s14 = int_to_ptr.vmem [resolvable:$true] %s335_s14 }
  0x14   :  { %383 = vpow2.f32 %v82_v12  ;;  %v200_v19 = vmul.f32 1.442695, %v199_v15  ;;  %v257_v21 = vand.u32 2147483647, %v656_v16  ;;  %v276_v22 = vand.u32 2147483647, %v648_v10 }
  0x15   :  { %v141_v17 = vmul.f32 1.442695, %v140_v13  ;;  %385 = vpow2.f32 %v161_v14  ;;  %v673_v27 = vmul.f32 %v662_v18, %v662_v18  ;;  %v138_v29 = vmax.f32 %v635_v3, 0.0  ;;  %s337_s17 = sshll.u32 %s840_s12, 4  ;;  %s326_s19 = sshll.u32 %s839_s11, 4  ;;  %s338_s17 = int_to_ptr.hbm [resolvable:$true] %s337_s17  ;;  %s327_s19 = int_to_ptr.hbm [resolvable:$true] %s326_s19 }
  0x16   :  { %v258_v30 = vsub.f32 0.0, %v257_v21  ;;  %v277_v31 = vsub.f32 0.0, %v276_v22  ;;  %v197_v35 = vmax.f32 %v641_v5, 0.0  ;;  %v154_v37 = vstv %s651_s21  ;;  %s546_s12 = smov [#allocation10]   ;;  %s348_s11 = sshll.u32 %s841_s13, 4  ;;  %s349_s11 = int_to_ptr.hbm [resolvable:$true] %s348_s11 }
  0x17   :  { %387 = vpow2.f32 %v141_v17  ;;  %v174_v39 = vstv %s653_s7  ;;  %v180_v40 = vstv %s658_s22  ;;  %v186_v44 = vstv %s660_s8  ;;  %s346_s1 = sshll.u32 %s546_s12, 4  ;;  %s347_s1 = int_to_ptr.vmem [resolvable:$true] %s346_s1 }
  0x18   :  { %389 = vpow2.f32 %v200_v19  ;;  %v259_v47 = vmul.f32 1.442695, %v258_v30  ;;  %v278_v48 = vmul.f32 1.442695, %v277_v31  ;;  %v721_v31 = vld [vmem:[%s834_s6] sm:$0x1] }
  0x19   :  { %v382_v23 = vpop.eup %381  ;;  %391 = vpow2.f32 %v238_v20  ;;  %v298_v3 = vmul.f32 %v721_v31, %v721_v31 }
  0x1a   :  { %v668_v25 = vadd.f32 1.0, %v382_v23  ;;  %v384_v28 = vpop.eup %383  ;;  %v256_v23 = vmax.f32 %v656_v16, 0.0  ;;  %v275_v16 = vmax.f32 %v648_v10, 0.0 }
  0x1b   :  { %v386_v32 = vpop.eup %385  ;;  %v84_v33 = vadd.f32 1.0, %v384_v28  ;;  %v87_v34 = vmul.f32 -0.5, %v384_v28  ;;  %v90_v42 = vand.u32 2147483647, %v384_v28 }
  0x1c   :  { %393 = vrcp.f32 %v668_v25  ;;  %v163_v38 = vadd.f32 1.0, %v386_v32  ;;  %vm128_vm0 = vweird.f32 %v668_v25  ;;  %v132_v49 = vand.u32 2147483647, %v668_v25 }
  0x1d   :  { %v388_v36 = vpop.eup %387  ;;  %395 = vlog2.f32 %v84_v33  ;;  %v88_v45 = vadd.f32 1.0, %v87_v34  ;;  %v166_v50 = vmul.f32 -0.5, %v386_v32  ;;  %v134_v52 = vand.u32 2147483648, %v668_v25 }
  0x1e   :  { %v390_v41 = vpop.eup %389  ;;  %v143_v43 = vadd.f32 1.0, %v388_v36  ;;  %v146_v46 = vmul.f32 -0.5, %v388_v36  ;;  %vm685_vm1 = vcmp.lt.f32.partialorder %v90_v42, 0.0004427343  ;;  %v149_v57 = vand.u32 2147483647, %v388_v36 }
  0x1f   :  { %v392_v51 = vpop.eup %391  ;;  %v202_v54 = vadd.f32 1.0, %v390_v41  ;;  %v167_v58 = vadd.f32 1.0, %v166_v50  ;;  %v205_v59 = vmul.f32 -0.5, %v390_v41  ;;  %v89_v60 = vmul.f32 %v384_v28, %v88_v45 }
  0x20   :  { %397 = vlog2.f32 %v143_v43  ;;  %v147_v53 = vadd.f32 1.0, %v146_v46  ;;  %v169_v62 = vand.u32 2147483647, %v386_v32  ;;  %v208_v4 = vand.u32 2147483647, %v390_v41 }
  0x21   :  { %399 = vlog2.f32 %v163_v38  ;;  %v690_v6 = vadd.f32 1.0, %v392_v51  ;;  %v206_v9 = vadd.f32 1.0, %v205_v59  ;;  %vm692_vm3 = vcmp.eq.f32.partialorder %v132_v49, 8.507059e+37 }
  0x22   :  { %v394_v55 = vpop.eup %393  ;;  %401 = vlog2.f32 %v202_v54  ;;  %v148_v2 = vmul.f32 %v388_v36, %v147_v53  ;;  %vm696_vm4 = vcmp.lt.f32.partialorder %v149_v57, 0.0004427343  ;;  %v168_v14 = vmul.f32 %v386_v32, %v167_v58 }
  0x23   :  { %v124_v61 = vmul.f32 %v394_v55, %v668_v25  ;;  %v396_v63 = vpop.eup %395  ;;  %vm129_vm2 = vweird.f32 %v394_v55  ;;  %403 = vpow2.f32 %v259_v47  ;;  %vm703_vm5 = vcmp.lt.f32.partialorder %v169_v62, 0.0004427343 }
  0x24   :  { %v86_v7 = vmul.f32 0.6931472, %v396_v63  ;;  %405 = vrcp.f32 %v690_v6  ;;  %vm714_vm6 = vmor %vm128_vm0, %vm129_vm2  ;;  %v135_v28 = vor.u32 1.1754944e-38, %v134_v52  ;;  %vm725_vm7 = vcmp.lt.f32.partialorder %v208_v4, 0.0004427343 }
  0x25   :  { %v125_v8 = vsub.f32 1.0, %v124_v61  ;;  %407 = vpow2.f32 %v278_v48  ;;  %vm246_vm8 = vweird.f32 %v690_v6  ;;  %v250_v56 = vand.u32 2147483647, %v690_v6 }
  0x26   :  { %v398_v11 = vpop.eup %397  ;;  %v92_v17 = vsel %vm685_vm1, %v89_v60, %v86_v7 }
  0x27   :  { %v400_v15 = vpop.eup %399  ;;  %v126_v19 = vmul.f32 %v394_v55, %v125_v8  ;;  %v145_v20 = vmul.f32 0.6931472, %v398_v11  ;;  %v709_v22 = vadd.f32 %v92_v17, %v79_v24  ;;  %v207_v24 = vmul.f32 %v390_v41, %v206_v9 }
  0x28   :  { %v165_v30 = vmul.f32 0.6931472, %v400_v15  ;;  %v402_v32 = vpop.eup %401  ;;  %v252_v9 = vand.u32 2147483648, %v690_v6  ;;  %vm779_vm12 = vcmp.eq.f32.partialorder %v250_v56, 8.507059e+37 }
  0x29   :  { %v127_v33 = vadd.f32 %v394_v55, %v126_v19  ;;  %v151_v0 = vsel %vm696_vm4, %v148_v2, %v145_v20  ;;  %409 = vlog2.f32 %v709_v22  ;;  %v182_v38 = vmul.f32 %v709_v22, %v709_v22  ;;  %v404_v42 = vpop.eup %403 }
  0x2a   :  { %v152_v34 = vadd.f32 %v151_v0, %v138_v29  ;;  %v171_v36 = vsel %vm703_vm5, %v168_v14, %v165_v30  ;;  %v204_v45 = vmul.f32 0.6931472, %v402_v32  ;;  %v742_v29 = vpop.eup %405  ;;  %v261_v49 = vadd.f32 1.0, %v404_v42 }
  0x2b   :  { %v131_v41 = vsel %vm714_vm6, %v394_v55, %v127_v33  ;;  %v172_v43 = vadd.f32 %v171_v36, %v158_v26  ;;  %v184_v48 = vadd.f32 %v673_v27, %v182_v38  ;;  %v242_v26 = vmul.f32 %v742_v29, %v690_v6  ;;  %v408_v52 = vpop.eup %407 }
  0x2c   :  { %v136_v46 = vsel %vm692_vm3, %v135_v28, %v131_v41  ;;  %v153_v47 = vsub.f32 0.0, %v152_v34  ;;  %v210_v51 = vsel %vm725_vm7, %v207_v24, %v204_v45  ;;  %411 = vlog2.f32 %v261_v49 }
  0x2d   :  { %v173_v50 = vsub.f32 0.0, %v172_v43  ;;  %v157_v54 = vsub.f32 1.0, %v136_v46  ;;  %v185_v55 = vmul.f32 0.5, %v184_v48  ;;  %v243_v57 = vsub.f32 1.0, %v242_v26 }
  0x2e   :  { %v155_v53 = vsub.f32 %v153_v47, %v154_v37  ;;  %v264_v58 = vmul.f32 -0.5, %v404_v42  ;;  %v761_v61 = vadd.f32 %v210_v51, %v197_v35  ;;  %vm247_vm9 = vweird.f32 %v742_v29 }
  0x2f   :  { %v175_v27 = vsub.f32 %v173_v50, %v174_v39  ;;  %v410_v59 = vpop.eup %409  ;;  %v187_v60 = vmul.f32 %v186_v44, %v185_v55  ;;  %v280_v62 = vadd.f32 1.0, %v408_v52  ;;  %v244_v2 = vmul.f32 %v742_v29, %v243_v57  ;;  %vm771_vm10 = vmor %vm246_vm8, %vm247_vm9 }
  0x30   :  { %v179_v63 = vmul.f32 0.6931472, %v410_v59  ;;  %v265_v4 = vadd.f32 1.0, %v264_v58  ;;  %v267_v7 = vand.u32 2147483647, %v404_v42  ;;  %v156_v8 = vmul.f32 %v155_v53, %v136_v46 }
  0x31   :  { %413 = vlog2.f32 %v280_v62  ;;  %v283_v11 = vmul.f32 -0.5, %v408_v52  ;;  %v176_v12 = vmul.f32 %v175_v27, %v157_v54  ;;  %v245_v5 = vadd.f32 %v742_v29, %v244_v2 }
  0x32   :  { %v181_v13 = vsub.f32 %v180_v40, %v179_v63  ;;  %v286_v35 = vand.u32 2147483647, %v408_v52  ;;  %v266_v15 = vmul.f32 %v404_v42, %v265_v4  ;;  %415 = vlog2.f32 %v761_v61  ;;  %v412_v20 = vpop.eup %411  ;;  %v77_v63 = vld [vmem:[%s832_s4] sm:$0x1] }
  0x33   :  { %v284_v17 = vadd.f32 1.0, %v283_v11  ;;  %v297_v19 = vmul.f32 %v761_v61, %v761_v61  ;;  %vm268_vm11 = vcmp.lt.f32.partialorder %v267_v7, 0.0004427343  ;;  %v253_v6 = vor.u32 1.1754944e-38, %v252_v9 }
  0x34   :  { %v188_v21 = vadd.f32 %v187_v60, %v181_v13  ;;  %v263_v30 = vmul.f32 0.6931472, %v412_v20  ;;  %v177_v33 = vadd.f32 %v176_v12, %v156_v8  ;;  %v249_v24 = vsel %vm771_vm10, %v742_v29, %v245_v5 }
  0x35   :  { %v299_v32 = vadd.f32 %v298_v3, %v297_v19  ;;  %v285_v25 = vmul.f32 %v408_v52, %v284_v17  ;;  %vm287_vm13 = vcmp.lt.f32.partialorder %v286_v35, 0.0004427343  ;;  %v254_v3 = vsel %vm779_vm12, %v253_v6, %v249_v24 }
  0x36   :  { %v372_v0 = vadd.f32 -0.5, %v188_v21  ;;  %v269_v36 = vsel %vm268_vm11, %v266_v15, %v263_v30  ;;  %v274_v53 = vsub.f32 1.0, %v254_v3  ;;  %v94_v2 = vsub.f32 1.0, %v77_v63 }
  0x37   :  { %v414_v34 = vpop.eup %413  ;;  %v300_v38 = vmul.f32 0.5, %v299_v32  ;;  %v270_v41 = vadd.f32 %v269_v36, %v256_v23  ;;  %vm317_vm10 = vcmask 0  }
  0x38   :  { %v190_v42 = vmul.f32 %v372_v0, %v136_v46  ;;  %v282_v43 = vmul.f32 0.6931472, %v414_v34  ;;  %v416_v45 = vpop.eup %415  ;;  %vm100_vm3 = vweird.f32 %v94_v2  ;;  %v104_v20 = vand.u32 2147483647, %v94_v2 }
  0x39   :  { %v301_v29 = vmul.f32 %v300_v38, %v186_v44  ;;  %v271_v48 = vsub.f32 0.0, %v270_v41  ;;  %v295_v50 = vmul.f32 0.6931472, %v416_v45  ;;  %v106_v21 = vand.u32 2147483648, %v94_v2  ;;  %v78_v38 = vld [vmem:[%s833_s5] sm:$0x1] }
  0x3a   :  { %v191_v47 = vadd.f32 %v190_v42, %v177_v33  ;;  %v288_v49 = vsel %vm287_vm13, %v285_v25, %v282_v43  ;;  %vm105_vm7 = vcmp.eq.f32.partialorder %v104_v20, 8.507059e+37  ;;  %v196_v25 = vld [vmem:[%s838_s10] sm:$0x1]  ;;  %v116_v41 = vmul.f32 %v709_v22, %v78_v38  ;;  %s545_s10 = smov [#allocation7]  }
  0x3b   :  { %v289_v51 = vadd.f32 %v288_v49, %v275_v16  ;;  %v272_v52 = vsub.f32 %v271_v48, %v154_v37  ;;  %v296_v46 = vsub.f32 %v180_v40, %v295_v50  ;;  %v195_v37 = vld [vmem:[%s837_s9] sm:$0x1]  ;;  %v107_v30 = vor.u32 1.1754944e-38, %v106_v21  ;;  %s324_s5 = sshll.u32 %s545_s10, 4  ;;  %s325_s5 = int_to_ptr.vmem [resolvable:$true] %s324_s5 }
  0x3c   :  { %v310_v26 = vsel %vm306_vm14, %v191_v47, 0.0  ;;  %v212_v40 = vsub.f32 1.0, %v195_v37  ;;  %v234_v16 = vmul.f32 %v761_v61, %v196_v25  ;;  %v544_v45 = vmov 0.0  }
  0x3d   :  { %311 = vadd.xlane.f32.xlu0 %v310_v26  ;;  %v290_v54 = vsub.f32 0.0, %v289_v51  ;;  %v302_v55 = vadd.f32 %v301_v29, %v296_v46  ;;  %v273_v56 = vmul.f32 %v272_v52, %v254_v3 }
  0x3e   :  { %417 = vrcp.f32 %v212_v40  ;;  %v224_v13 = vand.u32 2147483648, %v212_v40  ;;  %vm218_vm0 = vweird.f32 %v212_v40  ;;  %v222_v14 = vand.u32 2147483647, %v212_v40 }
  0x3f   :  { %v291_v27 = vsub.f32 %v290_v54, %v174_v39  ;;  %v374_v57 = vadd.f32 -0.5, %v302_v55  ;;  %419 = vrcp.f32 %v94_v2  ;;  %v235_v43 = vadd.f32 %v234_v16, %v721_v31 }
  0x40   :  { %v225_v15 = vor.u32 1.1754944e-38, %v224_v13  ;;  %vm223_vm5 = vcmp.eq.f32.partialorder %v222_v14, 8.507059e+37 }
  0x41   :  { %v292_v44 = vmul.f32 %v291_v27, %v274_v53  ;;  %v304_v58 = vmul.f32 %v374_v57, %v254_v3  ;;  %v117_v3 = vadd.f32 %v116_v41, %v662_v18 }
  0x43   :  { %v293_v59 = vadd.f32 %v292_v44, %v273_v56 }
  0x44   :  { %v418_v39 = vpop.eup %417 }
  0x45   :  { %v305_v60 = vadd.f32 %v304_v58, %v293_v59  ;;  %v420_v4 = vpop.eup %419  ;;  %v214_v7 = vmul.f32 %v418_v39, %v212_v40  ;;  %vm219_vm1 = vweird.f32 %v418_v39 }
  0x46   :  { %v96_v8 = vmul.f32 %v420_v4, %v94_v2  ;;  %vm220_vm2 = vmor %vm218_vm0, %vm219_vm1  ;;  %vm101_vm4 = vweird.f32 %v420_v4 }
  0x47   :  { %v313_v62 = vsel %vm308_vm15, %v305_v60, 0.0  ;;  %v215_v9 = vsub.f32 1.0, %v214_v7  ;;  %vm102_vm6 = vmor %vm100_vm3, %vm101_vm4 }
  0x48   :  { %314 = vadd.xlane.f32.xlu0 %v313_v62  ;;  %v97_v11 = vsub.f32 1.0, %v96_v8 }
  0x49   :  { %v216_v12 = vmul.f32 %v418_v39, %v215_v9 }
  0x4a   :  { %v98_v5 = vmul.f32 %v420_v4, %v97_v11 }
  0x4b   :  { %v217_v35 = vadd.f32 %v418_v39, %v216_v12 }
  0x4c   :  { %v99_v17 = vadd.f32 %v420_v4, %v98_v5 }
  0x4d   :  { %v221_v19 = vsel %vm220_vm2, %v418_v39, %v217_v35 }
  0x4e   :  { %v226_v23 = vsel %vm223_vm5, %v225_v15, %v221_v19  ;;  %v103_v28 = vsel %vm102_vm6, %v420_v4, %v99_v17 }
  0x4f   :  { %v227_v6 = vmul.f32 %v226_v23, %v195_v37  ;;  %v108_v32 = vsel %vm105_vm7, %v107_v30, %v103_v28 }
  0x50   :  { %v109_v33 = vmul.f32 %v108_v32, %v77_v63 }
  0x51   :  { %421 = vlog2.f32 %v227_v6 }
  0x52   :  { %423 = vlog2.f32 %v109_v33 }
  0x57   :  { %v422_v0 = vpop.eup %421 }
  0x58   :  { %v229_v24 = vmul.f32 0.6931472, %v422_v0  ;;  %v424_v34 = vpop.eup %423 }
  0x59   :  { %v111_v42 = vmul.f32 0.6931472, %v424_v34 }
  0x5a   :  { %v230_v36 = vadd.f32 %v229_v24, %v648_v10 }
  0x5b   :  { %v112_v61 = vadd.f32 %v111_v42, %v631_v1 }
  0x5c   :  { %vm231_vm8 = vcmp.gt.f32.partialorder %v230_v36, 0.0 }
  0x5d   :  { %v373_v10 = vsel %vm231_vm8, 1.0, %v544_v45  ;;  %vm113_vm9 = vcmp.gt.f32.partialorder %v112_v61, 0.0 }
  0x5e   :  { %v236_v29 = vmul.f32 %v373_v10, %v235_v43  ;;  %v371_v22 = vsel %vm113_vm9, 1.0, %v544_v45 }
  0x5f   :  { %v118_v31 = vmul.f32 %v371_v22, %v117_v3 }
  0x60   :  { %309 = vst.msk [vmem:[#allocation8] sm:$0x1] %vm308_vm15, %v236_v29 }
  0x61   :  { %340 = dma.vmem_to_hbm [thread:$0]  %s336_s14, 16, %s338_s17, [#allocation9]   ;;  %307 = vst.msk [vmem:[#allocation7] sm:$0x1] %vm306_vm14, %v118_v31 }
  0x62   :  { %329 = dma.vmem_to_hbm [thread:$0]  %s325_s5, 16, %s327_s19, [#allocation4]  }
  0xb0   :  { %v312_v1 = vpop.xlane.xlu0 %311 }
  0xbb   :  { %v315_v18 = vpop.xlane.xlu0 %314 }
  0xbc   :  { %v316_v47 = vadd.f32 %v315_v18, %v312_v1 }
  0xbe   :  { %318 = vst.msk [vmem:[#allocation10] sm:$0x1] %vm317_vm10, %v316_v47 }
  0xbf   :  { %351 = dma.vmem_to_hbm [thread:$0]  %s347_s1, 16, %s349_s11, [#allocation9]  }
  0xc0   :  { %537 = dma.done.wait [#allocation4], 16  }
  0xc1   :  { %538 = vsyncadd [#allocation4], 4294967280 }
  0xc2   :  { %539 = dma.done.wait [#allocation9], 32  }
  0xc3   :  { %540 = vsyncadd [#allocation9], 4294967264 }
  0xc4   :  { %364 = vsyncpa [#allocation3], 1 }
  0xc5   :  { %365 = vsyncpa [#allocation4], 1 }
  0xc6   :  { %366 = vsyncpa [#allocation9], 1 }
  0xc7   :  { %367 = vsyncpa [#allocation5], 1 }

</bundles_post_ra>
